<compile_context>
chip_gen: v7x
topology: tpu7x:2x2x1
jax: 0.10.0
libtpu: 0.0.40
codegen_flags: <defaults>
</compile_context>

<pallas_src>
import functools

import jax
import jax.numpy as jnp
from jax import lax
from jax.experimental import pallas as pl
from jax.experimental.pallas import tpu as pltpu


_V_CHUNK = 2048            # vocab columns per grid step in the streaming path
_SLAB_MIN_V = 8192         # auto-switch to the DMA slab gather above this V
_SLAB_MAX_ROWS = 512       # rows (== outstanding DMAs) per slab-path grid step
_SLAB_MAX_N = 128 * 1024   # keep the scalar-prefetch slab table small in SMEM


def _round_up(x, m):
    return ((x + m - 1) // m) * m


def _vmem_limits():
    """(tile_budget_bytes, vmem_limit_bytes) derived from the chip's VMEM."""
    phys = 64 * 1024 * 1024                       # conservative default (v7x/TC)
    try:
        phys = int(pltpu.get_tpu_info().vmem_capacity_bytes)
    except Exception:
        pass
    vmem_limit = max(16 * 1024 * 1024, min(phys * 3 // 4, 96 * 1024 * 1024))
    tile_budget = vmem_limit * 4 // 5             # headroom for temporaries
    return tile_budget, vmem_limit


def _full_tiling(n, v, itemsize, tile_budget):
    """Pick (tile_rows, v_chunk) for the streaming path."""
    v_chunk = min(v, _V_CHUNK) if v % 128 == 0 else v
    n_pad = _round_up(n, 8)
    # Per-row VMEM: double-buffered logits chunk + padded (row,1) target/mask
    # blocks (512 B/row per buffer) + (TM,128) f32 temporaries + f32 acc row.
    per_row = 2 * v_chunk * itemsize + 4096
    tm = max(8, tile_budget // per_row)
    tm = min(tm, 32 * 1024)                       # cap by bytes, not a row cap
    if n_pad >= 16:                               # >= 2 row steps (v7x megacore)
        tm = min(tm, _round_up((n_pad + 1) // 2, 8))
    tm = min(tm, n_pad)
    tm = (tm // 32) * 32 if tm >= 32 else max(8, (tm // 8) * 8)
    return tm, v_chunk


# --------------------------------------------------------------------------- #
# Streaming ("full") path                                                      #
# --------------------------------------------------------------------------- #
def _full_kernel(logits_ref, target_ref, mask_ref, out_ref, acc_ref, *, n_rows):
    i = pl.program_id(0)          # row-tile index
    j = pl.program_id(1)          # vocab-chunk index (reduction axis)
    tm, c = logits_ref.shape

    @pl.when(j == 0)
    def _init():
        acc_ref[...] = jnp.zeros_like(acc_ref)

    tgt = target_ref[...]                                     # (TM, 1) int32

    if c % 128 == 0:
        # Two-level select: pick the 128-lane block holding the target via a
        # (TM,1) block compare broadcast over lanes (select + add = ~2 VALU ops
        # per logit, in the logits' native dtype), then one lane compare.
        nblk = c // 128
        tgt_blk = tgt // 128
        tgt_lane = tgt % 128
        base_blk = j * nblk
        slab = jnp.zeros((tm, 128), logits_ref.dtype)
        for kk in range(nblk):                                # static unroll
            blk = logits_ref[:, kk * 128:(kk + 1) * 128]      # (TM, 128)
            slab = slab + jnp.where(tgt_blk == base_blk + kk, blk, 0)
        lane_ids = lax.broadcasted_iota(jnp.int32, (tm, 128), 1)
        picked = jnp.sum(
            jnp.where(lane_ids == tgt_lane, slab, 0).astype(jnp.float32),
            axis=1, keepdims=True)                            # (TM, 1) f32
    else:
        # Small / odd vocab: plain one-hot gather over the whole (single) chunk.
        col_ids = j * c + lax.broadcasted_iota(jnp.int32, (tm, c), 1)
        picked = jnp.sum(
            jnp.where(col_ids == tgt, logits_ref[...], 0).astype(jnp.float32),
            axis=1, keepdims=True)

    acc_ref[...] += picked

    @pl.when(j == pl.num_programs(1) - 1)
    def _finalize():
        msk = mask_ref[...]                                   # (TM, 1) f32
        row_ids = i * tm + lax.broadcasted_iota(jnp.int32, (tm, 1), 0)
        valid = row_ids < n_rows                              # ragged last tile
        loss = jnp.where(valid, -acc_ref[...] * msk, 0.0)
        out_ref[...] = jnp.broadcast_to(jnp.sum(loss), out_ref.shape)


def _full_path(logits2d, target2d, mask2d, n, v, tile_rows, v_chunk_override):
    tile_budget, vmem_limit = _vmem_limits()
    auto_tm, v_chunk = _full_tiling(n, v, logits2d.dtype.itemsize, tile_budget)
    if v_chunk_override is not None:
        assert v_chunk_override == v or (v % 128 == 0 and v_chunk_override % 128 == 0)
        v_chunk = v_chunk_override
    tm = tile_rows if tile_rows is not None else auto_tm
    grid = (pl.cdiv(n, tm), pl.cdiv(v, v_chunk))
    kernel = functools.partial(_full_kernel, n_rows=n)
    return pl.pallas_call(
        kernel,
        out_shape=jax.ShapeDtypeStruct((grid[0], 8, 128), jnp.float32),
        grid_spec=pltpu.PrefetchScalarGridSpec(
            num_scalar_prefetch=0,
            grid=grid,
            in_specs=[
                pl.BlockSpec((tm, v_chunk), lambda i, j: (i, j)),
                pl.BlockSpec((tm, 1), lambda i, j: (i, 0)),
                pl.BlockSpec((tm, 1), lambda i, j: (i, 0)),
            ],
            out_specs=pl.BlockSpec((1, 8, 128), lambda i, j: (i, 0, 0)),
            scratch_shapes=[pltpu.VMEM((tm, 1), jnp.float32)],
        ),
        compiler_params=pltpu.CompilerParams(
            dimension_semantics=("parallel", "arbitrary"),
            vmem_limit_bytes=vmem_limit,
        ),
    )(logits2d, target2d, mask2d)


# --------------------------------------------------------------------------- #
# Slab-gather ("slab") path: manual per-row DMA of the 128-lane target slab    #
# --------------------------------------------------------------------------- #
def _slab_kernel(slab_ref, logits_hbm, target_ref, mask_ref, out_ref,
                 slab_buf, sem, *, n_rows, tile_rows, v):
    i = pl.program_id(0)
    row0 = i * tile_rows
    tm = tile_rows
    max_slab = v // 128 - 1

    # Issue one small DMA per row: the (1, 128) lane slab holding its target.
    @pl.loop(0, tm)
    def _issue(r):
        row = jnp.minimum(row0 + r, n_rows - 1)       # clamp: never OOB-DMA
        s = jnp.clip(slab_ref[row], 0, max_slab)
        start = pl.multiple_of(s * 128, 128)
        pltpu.make_async_copy(
            logits_hbm.at[pl.ds(row, 1), pl.ds(start, 128)],
            slab_buf.at[pl.ds(r, 1), :],
            sem.at[0],
        ).start()

    # All copies have identical shapes, so waiting `tm` times with a
    # same-shaped descriptor on the shared semaphore covers all of them.
    @pl.loop(0, tm)
    def _wait(r):
        pltpu.make_async_copy(
            logits_hbm.at[pl.ds(0, 1), pl.ds(0, 128)],
            slab_buf.at[pl.ds(r, 1), :],
            sem.at[0],
        ).wait()

    tgt = target_ref[...]                             # (TM, 1) int32
    msk = mask_ref[...]                               # (TM, 1) f32
    tgt_lane = tgt % 128
    lane_ids = lax.broadcasted_iota(jnp.int32, (tm, 128), 1)
    picked = jnp.sum(
        jnp.where(lane_ids == tgt_lane, slab_buf[...], 0).astype(jnp.float32),
        axis=1, keepdims=True)                        # (TM, 1) f32

    row_ids = row0 + lax.broadcasted_iota(jnp.int32, (tm, 1), 0)
    valid = row_ids < n_rows
    loss = jnp.where(valid, -picked * msk, 0.0)
    out_ref[...] = jnp.broadcast_to(jnp.sum(loss), out_ref.shape)


def _slab_path(logits2d, target2d, mask2d, n, v, tile_rows):
    _, vmem_limit = _vmem_limits()
    n_pad = _round_up(n, 8)
    if tile_rows is None:
        tm = _SLAB_MAX_ROWS
        if n_pad >= 16:                               # >= 2 steps for v7x split
            tm = min(tm, _round_up((n_pad + 1) // 2, 8))
        tm = max(8, (min(tm, n_pad) // 8) * 8)
    else:
        tm = tile_rows
    grid_rows = pl.cdiv(n, tm)
    slab = (target2d[:, 0] // 128).astype(jnp.int32)  # (n,) -> SMEM prefetch
    kernel = functools.partial(_slab_kernel, n_rows=n, tile_rows=tm, v=v)
    return pl.pallas_call(
        kernel,
        out_shape=jax.ShapeDtypeStruct((grid_rows, 8, 128), jnp.float32),
        grid_spec=pltpu.PrefetchScalarGridSpec(
            num_scalar_prefetch=1,
            grid=(grid_rows,),
            in_specs=[
                pl.BlockSpec(memory_space=pl.ANY),               # logits in HBM
                pl.BlockSpec((tm, 1), lambda i, sl: (i, 0)),     # target
                pl.BlockSpec((tm, 1), lambda i, sl: (i, 0)),     # mask
            ],
            out_specs=pl.BlockSpec((1, 8, 128), lambda i, sl: (i, 0, 0)),
            scratch_shapes=[
                pltpu.VMEM((tm, 128), logits2d.dtype),
                pltpu.SemaphoreType.DMA((1,)),
            ],
        ),
        compiler_params=pltpu.CompilerParams(
            dimension_semantics=("parallel",),
            vmem_limit_bytes=vmem_limit,
        ),
    )(slab, logits2d, target2d, mask2d)


# --------------------------------------------------------------------------- #
# Public wrapper (matches the PyTorch module forward)                          #
# --------------------------------------------------------------------------- #
def language_model_criterion(logits, target, mask, *, gather_mode="auto",
                             tile_rows=None, v_chunk=None):
    """logits: [B,T,V] log-probs, target: [B,T_t] int, mask: [B,T_t] float."""
    b, t, v = logits.shape
    target = target[:, :t]
    mask = mask[:, :t]
    n = b * t

    logits2d = logits.reshape(n, v)                   # stays in native dtype
    target2d = target.reshape(n, 1).astype(jnp.int32)
    mask2d = mask.reshape(n, 1).astype(jnp.float32)

    mode = gather_mode
    if mode == "auto":
        mode = "slab" if (v % 128 == 0 and v >= _SLAB_MIN_V) else "full"
    if mode == "slab" and (v % 128 != 0 or v < 128 or n > _SLAB_MAX_N):
        mode = "full"                                 # slab-path prerequisites

    if mode == "slab":
        partials = _slab_path(logits2d, target2d, mask2d, n, v, tile_rows)
    else:
        partials = _full_path(logits2d, target2d, mask2d, n, v, tile_rows,
                              v_chunk)

    # Tiny epilogue: sum per-tile partials, divide by batch size (the PyTorch
    # module divides by B, not by sum(mask)).
    return jnp.sum(partials[:, 0, 0]) / jnp.float32(b)


def _reference(logits, target, mask):
    b, t, v = logits.shape
    target = target[:, :t].reshape(-1)
    mask = mask[:, :t].reshape(-1).astype(jnp.float32)
    logits2d = logits.reshape(-1, v).astype(jnp.float32)
    nll = -jnp.take_along_axis(logits2d, target[:, None], axis=1)[:, 0]
    return jnp.sum(nll * mask) / b


if __name__ == "__main__":
    key = jax.random.PRNGKey(0)

    def run_case(B, T, V, dtype, gather_mode, v_chunk=None):
        k1, k2, k3 = jax.random.split(jax.random.fold_in(key, V), 3)
        raw = jax.random.normal(k1, (B, T, V), dtype=jnp.float32)
        logits = jax.nn.log_softmax(raw, axis=-1).astype(dtype)
        # target/mask deliberately longer than T (the module slices them)
        tgt = jax.random.randint(k2, (B, T + 2), 0, V, dtype=jnp.int32)
        msk = (jax.random.uniform(k3, (B, T + 2)) > 0.3).astype(jnp.float32)
        out = language_model_criterion(logits, tgt, msk,
                                       gather_mode=gather_mode, v_chunk=v_chunk)
        jax.block_until_ready(out)
        ref = _reference(logits, tgt, msk)
        assert jnp.allclose(out, ref, rtol=1e-5, atol=1e-5), (
            gather_mode, dtype, out, ref)

    # odd small vocab (V % 128 != 0) -> simple one-hot path, ragged rows (N=18)
    run_case(2, 9, 32, jnp.float32, "full")
    # V multiple of 128 -> two-level select path, bf16 and f32 logits
    run_case(2, 9, 256, jnp.bfloat16, "full")
    # force multiple vocab chunks (grid_v > 1) to exercise the j-accumulation
    run_case(2, 9, 256, jnp.float32, "full", v_chunk=128)
    # forced slab-gather (scalar-prefetch + manual DMA) path
    run_case(2, 9, 512, jnp.float32, "slab")
    run_case(2, 9, 512, jnp.bfloat16, "slab")

    print("KERNEL_OK")
</pallas_src>

<mosaic_0001>
module attributes {stable_mosaic.version = 11 : i64} {
  func.func @_full_kernel(%arg0: i32, %arg1: i32, %arg2: memref<16x32xf32, #tpu.memory_space<vmem>>, %arg3: memref<16x1xi32, #tpu.memory_space<vmem>>, %arg4: memref<16x1xf32, #tpu.memory_space<vmem>>, %arg5: memref<1x8x128xf32, #tpu.memory_space<vmem>>, %arg6: memref<16x1xf32, #tpu.memory_space<vmem>>) attributes {dimension_semantics = [#tpu.dimension_semantics<parallel>, #tpu.dimension_semantics<arbitrary>], iteration_bounds = array<i64: 2, 1>, scalar_prefetch = 0 : i64, scratch_operands = 1 : i64, tpu.core_type = #tpu.core_type<tc>, window_params = [{transform_indices = @transform_0, window_bounds = array<i64: 16, 32>}, {transform_indices = @transform_1, window_bounds = array<i64: 16, 1>}, {transform_indices = @transform_2, window_bounds = array<i64: 16, 1>}, {transform_indices = @transform_3, window_bounds = array<i64: 1, 8, 128>}]} {
    %c0_i32 = arith.constant 0 : i32
    %0 = arith.cmpi eq, %arg1, %c0_i32 : i32
    %1 = arith.extui %0 : i1 to i32
    %c0_i32_0 = arith.constant 0 : i32
    %2 = arith.cmpi ne, %1, %c0_i32_0 : i32
    scf.if %2 {
      %cst_11 = arith.constant 0.000000e+00 : f32
      %22 = vector.broadcast %cst_11 : f32 to vector<16x1xf32>
      %c0_12 = arith.constant 0 : index
      %c0_13 = arith.constant 0 : index
      %23 = vector.load %arg6[%c0_12, %c0_13] : memref<16x1xf32, #tpu.memory_space<vmem>>, vector<16x1xf32>
      tpu.vector_store %arg6[%c0_12, %c0_13], %22 {strides = array<i32>} : memref<16x1xf32, #tpu.memory_space<vmem>>, vector<16x1xf32>,
    } else {
    }
    %c0 = arith.constant 0 : index
    %c0_1 = arith.constant 0 : index
    %3 = vector.load %arg3[%c0, %c0_1] : memref<16x1xi32, #tpu.memory_space<vmem>>, vector<16x1xi32>
    %c32_i32 = arith.constant 32 : i32
    %4 = arith.muli %arg1, %c32_i32 : i32
    %5 = tpu.iota {dimensions = array<i32: 1>} : vector<16x32xi32>
    %6 = vector.broadcast %4 : i32 to vector<16x32xi32>
    %7 = arith.addi %6, %5 : vector<16x32xi32>
    %8 = vector.broadcast %3 : vector<16x1xi32> to vector<16x32xi32>
    %9 = arith.cmpi eq, %7, %8 : vector<16x32xi32>
    %c0_2 = arith.constant 0 : index
    %c0_3 = arith.constant 0 : index
    %10 = vector.load %arg2[%c0_2, %c0_3] : memref<16x32xf32, #tpu.memory_space<vmem>>, vector<16x32xf32>
    %c0_i32_4 = arith.constant 0 : i32
    %11 = arith.sitofp %c0_i32_4 : i32 to f32
    %12 = vector.broadcast %11 : f32 to vector<16x32xf32>
    %13 = arith.select %9, %10, %12 : vector<16x32xi1>, vector<16x32xf32>
    %cst = arith.constant dense<0.000000e+00> : vector<16xf32>
    %14 = vector.multi_reduction <add>, %13, %cst [1] : vector<16x32xf32> to vector<16xf32>
    %15 = vector.shape_cast %14 : vector<16xf32> to vector<16x1xf32>
    %c0_5 = arith.constant 0 : index
    %c0_6 = arith.constant 0 : index
    %16 = vector.load %arg6[%c0_5, %c0_6] : memref<16x1xf32, #tpu.memory_space<vmem>>, vector<16x1xf32>
    %17 = arith.addf %16, %15 : vector<16x1xf32>
    %c0_7 = arith.constant 0 : index
    %c0_8 = arith.constant 0 : index
    %18 = vector.load %arg6[%c0_7, %c0_8] : memref<16x1xf32, #tpu.memory_space<vmem>>, vector<16x1xf32>
    tpu.vector_store %arg6[%c0_7, %c0_8], %17 {strides = array<i32>} : memref<16x1xf32, #tpu.memory_space<vmem>>, vector<16x1xf32>,
    %c0_i32_9 = arith.constant 0 : i32
    %19 = arith.cmpi eq, %arg1, %c0_i32_9 : i32
    %20 = arith.extui %19 : i1 to i32
    %c0_i32_10 = arith.constant 0 : i32
    %21 = arith.cmpi ne, %20, %c0_i32_10 : i32
    scf.if %21 {
      %c0_11 = arith.constant 0 : index
      %c0_12 = arith.constant 0 : index
      %22 = vector.load %arg4[%c0_11, %c0_12] : memref<16x1xf32, #tpu.memory_space<vmem>>, vector<16x1xf32>
      %c16_i32 = arith.constant 16 : i32
      %23 = arith.muli %arg0, %c16_i32 : i32
      %24 = tpu.iota {dimensions = array<i32: 0>} : vector<16x1xi32>
      %25 = vector.broadcast %23 : i32 to vector<16x1xi32>
      %26 = arith.addi %25, %24 : vector<16x1xi32>
      %c18_i32 = arith.constant 18 : i32
      %27 = vector.broadcast %c18_i32 : i32 to vector<16x1xi32>
      %28 = arith.cmpi slt, %26, %27 : vector<16x1xi32>
      %c0_13 = arith.constant 0 : index
      %c0_14 = arith.constant 0 : index
      %29 = vector.load %arg6[%c0_13, %c0_14] : memref<16x1xf32, #tpu.memory_space<vmem>>, vector<16x1xf32>
      %cst_15 = arith.constant 0.000000e+00 : f32
      %30 = vector.broadcast %cst_15 : f32 to vector<16x1xf32>
      %31 = arith.subf %30, %29 : vector<16x1xf32>
      %32 = arith.mulf %31, %22 : vector<16x1xf32>
      %cst_16 = arith.constant 0.000000e+00 : f32
      %33 = vector.broadcast %cst_16 : f32 to vector<16x1xf32>
      %34 = arith.select %28, %32, %33 : vector<16x1xi1>, vector<16x1xf32>
      %35 = vector.shape_cast %34 : vector<16x1xf32> to vector<1x16x1xf32>
      %cst_17 = arith.constant dense<0.000000e+00> : vector<1xf32>
      %36 = vector.multi_reduction <add>, %35, %cst_17 [1, 2] : vector<1x16x1xf32> to vector<1xf32>
      %37 = vector.shape_cast %36 : vector<1xf32> to vector<1x1x1xf32>
      %38 = vector.extract %37[0, 0, 0] : f32 from vector<1x1x1xf32>
      %39 = vector.broadcast %38 : f32 to vector<1x8x128xf32>
      %c0_18 = arith.constant 0 : index
      %c0_19 = arith.constant 0 : index
      %c0_20 = arith.constant 0 : index
      %40 = vector.load %arg5[%c0_18, %c0_19, %c0_20] : memref<1x8x128xf32, #tpu.memory_space<vmem>>, vector<1x8x128xf32>
      tpu.vector_store %arg5[%c0_18, %c0_19, %c0_20], %39 {strides = array<i32>} : memref<1x8x128xf32, #tpu.memory_space<vmem>>, vector<1x8x128xf32>,
    } else {
    }
    return
  }
  func.func @transform_0(%arg0: i32, %arg1: i32) -> (i32, i32) {
    %c0_i32 = arith.constant 0 : i32
    return %arg0, %arg1 : i32, i32
  }
  func.func @transform_1(%arg0: i32, %arg1: i32) -> (i32, i32) {
    %c0_i32 = arith.constant 0 : i32
    %c0_i32_0 = arith.constant 0 : i32
    return %arg0, %c0_i32 : i32, i32
  }
  func.func @transform_2(%arg0: i32, %arg1: i32) -> (i32, i32) {
    %c0_i32 = arith.constant 0 : i32
    %c0_i32_0 = arith.constant 0 : i32
    return %arg0, %c0_i32 : i32, i32
  }
  func.func @transform_3(%arg0: i32, %arg1: i32) -> (i32, i32, i32) {
    %c0_i32 = arith.constant 0 : i32
    %c0_i32_0 = arith.constant 0 : i32
    %c0_i32_1 = arith.constant 0 : i32
    return %arg0, %c0_i32, %c0_i32_0 : i32, i32, i32
  }
}

</mosaic_0001>

<bundles_post_ra>
// kernel: tpu_custom_call.1
= control target key start
LH: loop header
LB: loop body
LE: loop exit
PB: predicated region body
PF: predicated region fallthrough
CT: control target
= control target key end

     0   :  { %8 = vsyncpa [#allocation4], 0  ;;  %s791_s0 = inlined_call_operand.vmem [shape: f32[18,32], index: 0, kind: input, shape index: {}]   ;;  %s792_s1 = inlined_call_operand.vmem [shape: s32[18,1], index: 1, kind: input, shape index: {}]   ;;  %s793_s2 = inlined_call_operand.vmem [shape: f32[18,1], index: 2, kind: input, shape index: {}]   ;;  %s794_s3 = inlined_call_operand.hbm [shape: f32[2,8,128], index: 3, kind: output, shape index: {}]  }
   0x1   :  { %10 = vsyncpa [#allocation4 + $0x1], 0  ;;  %s662_s12 = smov 0   ;;  %s664_s13 = smov 0  }
   0x2   :  { %s666_s14 = smov 0   ;;  %s668_s15 = smov 0  }
   0x3   :  { %s670_s16 = smov 0   ;;  %s672_s17 = smov 0  }
   0x4 LB: > { %s482_s18 = sadd.s32 4294967295, %s637_s17   ;;  %s483_s19 = sadd.s32 4294967294, %s637_s17   ;;  %s637_s17 = sphi %s672_s17, %s16_s17   ;;  %s633_s16 = sphi %s670_s16, %s801_s16   ;;  %s629_s15 = sphi %s668_s15, %s800_s15   ;;  %s625_s14 = sphi %s666_s14, %s799_s14   ;;  %s621_s13 = sphi %s664_s13, %s798_s13   ;;  %s617_s12 = sphi %s662_s12, %s797_s12  }
   0x5   : > { %s28_s20 = sadd.s32 1, %s633_s16  ;;  %s115_s21 = sadd.s32 1, %s625_s14 }
   0x6   : > { %p30_p0 = scmp.ge.s32.totalorder %s28_s20, 2  ;;  %p125_p1 = scmp.ne.s32.totalorder %s625_s14, %s621_s13 }
   0x7   : > { %p126_p2 = scmp.eq.s32.totalorder %s482_s18, 1  ;;  %p131_p3 = scmp.ne.s32.totalorder %s621_s13, %s617_s12 }
   0x8   : > { %s803_s20 = smov (%p30_p0, %s28_s20), 0  ;;  %p132_p5 = scmp.eq.s32.totalorder %s483_s19, 1 }
   0x9   : > { %p702_p4 = por %p126_p2, %p125_p1  ;;  %s112_s23 = ssub.s32 %s633_s16, %s803_s20 }
   0xa   : > { %p486_p6 = scmp.ge.s32.totalorder %s637_s17, 1  ;;  %p113_p7 = scmp.eq.s32.totalorder %s112_s23, 0 }
   0xb   : > { %p709_p8 = por %p132_p5, %p131_p3  ;;  %p204_p9 = scmp.lt.s32.totalorder %s637_s17, 3 }
   0xc   : > { %s715_s25 = scalar_select %p113_p7, %s625_s14, %s115_s21  }
   0xd   : > { %p205_p10 = pnand %p486_p6, %p204_p9 }
   0xe   : > { %s488_s26 = sshll.u32 (!%p205_p10), %s629_s15, 1  ;;  %v639_v0 = vmov (!%p205_p10), 0   ;;  %vm302_vm0 = vcmask (!%p205_p10), 7168   ;;  %v640_v3 = vmov (!%p205_p10), 0.0   ;;  %v308_v4 = vlaneseq (!%p205_p10)  ;;  %s494_s7 = sshll.u32 (!%p205_p10), %s629_s15, 4 }
   0xf   : > { %208 = sbr.rel (%p205_p10) target bundleno = 540 (0x21c), region = 32  ;;  %558 = vset.pattern.permute.xlu0 (!%p205_p10), %v639_v0  ;;  %p258_p11 = scmp.lt.s32.totalorder (!%p205_p10), %s488_s26, 2  ;;  %303 = vst.msk [vmem:[#allocation2] sm:$0xff] (!%p205_p10), %vm302_vm0, %v640_v3  ;;  %304 = vst.msk [vmem:[#allocation2 + $0x8] sm:$0xff] (!%p205_p10), %vm302_vm0, %v640_v3  ;;  %vm324_vm1 = vcmask (!%p205_p10), 261120   ;;  %v347_v21 = vstv (!%p205_p10), %s494_s7 }
  0x10   : > { %v309_v5 = vand.u32 (!%p205_p10), 127, %v308_v4  ;;  %v345_v18 = vshrl.u32 (!%p205_p10), %v308_v4, 7  ;;  %s250_s11 = sand.u32 (!%p205_p10), 1, %s621_s13   ;;  %s496_s23 = sshll.u32 (!%p205_p10), %s629_s15, 7 }
  0x11   : > { %s487_s18 = sshll.u32 (!%p205_p10), %s250_s11, 3  ;;  %s746_s29 = scalar_lea.hbm (!%p205_p10), %s794_s3, %s496_s23 }
  0x12   : > { %v346_v22 = vadd.s32 (!%p205_p10), 8, %v345_v18  ;;  %v348_v23 = vadd.s32 (!%p205_p10), %v347_v21, %v345_v18  ;;  %s252_s19 = scalar_lea.vmem (!%p205_p10), [#allocation3], %s487_s18  ;;  %s641_s15 = smov (!%p205_p10), [#allocation3]  }
  0x13   : > { %s388_s21 = sshll.u32 (!%p205_p10), %s252_s19, 4  ;;  %s563_s5 = sshll.u32 (!%p205_p10), %s641_s15, 4  ;;  %s741_s21 = int_to_ptr.vmem [resolvable:$true] %s388_s21  ;;  %s564_s5 = int_to_ptr.vmem [resolvable:$false] %s563_s5 }
  0x14   : > { %v349_v27 = vadd.s32 (!%p205_p10), %v347_v21, %v346_v22  ;;  %vm350_vm4 = vcmp.lt.s32.totalorder (!%p205_p10), %v348_v23, 18  ;;  %s559_s4 = scalar_lea.vmem (!%p205_p10), %s741_s21, 128  ;;  %p566_p1 = scmp.lt.s32.totalorder (!%p205_p10), %s741_s21, %s564_s5 }
  0x15   : > { %p560_p12 = scmp.ne.s32.totalorder (!%p205_p10), %s741_s21, %s559_s4 }
  0x16   : > { %s805_s26 = smov (!%p258_p11, %s488_s26), 2  ;;  %v331_v14 = vld [vmem:[#allocation2] sm:$0xff]  ;;  %v332_v17 = vld [vmem:[#allocation2 + $0x8] sm:$0xff]  ;;  %vm351_vm5 = vcmp.lt.s32.totalorder %v349_v27, 18 }
  0x17   : > { %s718_s27 = sshll.u32 %s805_s26, 3  ;;  %p561_p13 = pnand %p560_p12, %p702_p4 }
  0x18   : > { %s278_s30 = scalar_lea.vmem %s792_s1, %s718_s27  ;;  %s264_s6 = scalar_lea.vmem %s791_s0, %s718_s27 }
  0x19   : > { %v305_v1 = vld [vmem:[%s278_s30] sm:$0xff]  ;;  %v306_v2 = vld [vmem:[%s278_s30 + $0x8] sm:$0xff]  ;;  %s292_s10 = scalar_lea.vmem %s793_s2, %s718_s27  ;;  %s375_s30 = scalar_lea.sflag [#allocation4], %s250_s11 }
  0x1a   : > { %313 = vperm.xlu0 %558, %v305_v1   ;;  %v320_v6 = vld [vmem:[%s264_s6] sm:$0xff]  ;;  %v321_v10 = vld [vmem:[%s264_s6 + $0x8] sm:$0xff]  ;;  %p562_p0 = pneg %p561_p13  ;;  %s565_s6 = scalar_lea.vmem %s564_s5, 256 }
  0x1b   : > { %v341_v24 = vld [vmem:[%s292_s10] sm:$0xff]  ;;  %v342_v29 = vld [vmem:[%s292_s10 + $0x8] sm:$0xff]  ;;  %p567_p2 = scmp.lt.s32.totalorder %s565_s6, %s559_s4 }
  0x1d   : > { %p568_p3 = por %p567_p2, %p566_p1 }
  0x1e   : > { %316 = vperm.xlu0 %558, %v306_v2  }
  0x1f   : > { %p569_p5 = pnand %p568_p3, %p562_p0 }
  0x99   : > { %v314_v7 = vpop.permute.xlu0 %313 }
  0x9a   : > { %vm318_vm2 = vcmp.eq.s32.totalorder %v309_v5, %v314_v7 }
  0x9b   : > { %v322_v8 = vsel %vm318_vm2, %v320_v6, 0.0 }
  0x9c   : > { %v325_v9 = vsel %vm324_vm1, %v322_v8, 0.0 }
  0x9d   : > { %v317_v11 = vpop.permute.xlu0 %316  ;;  %326 = vadd.xlane.f32.xlu1 %v325_v9 }
  0x9e   : > { %vm319_vm3 = vcmp.eq.s32.totalorder %v309_v5, %v317_v11 }
  0x9f   : > { %v323_v12 = vsel %vm319_vm3, %v321_v10, 0.0 }
  0xa0   : > { %v328_v13 = vsel %vm324_vm1, %v323_v12, 0.0 }
  0xa1   : > { %329 = vadd.xlane.f32.xlu1 %v328_v13 }
 0x12a   : > { %v327_v15 = vpop.xlane.xlu1 %326 }
 0x12b   : > { %v333_v16 = vadd.f32 %v331_v14, %v327_v15 }
 0x12d   : > { %336 = vst.msk [vmem:[#allocation2] sm:$0xff] %vm302_vm0, %v333_v16 }
 0x12e   : > { %v330_v19 = vpop.xlane.xlu1 %329 }
 0x12f   : > { %v334_v20 = vadd.f32 %v332_v17, %v330_v19 }
 0x131   : > { %337 = vst.msk [vmem:[#allocation2 + $0x8] sm:$0xff] %vm302_vm0, %v334_v20 }
 0x134   : > { %v352_v25 = vld [vmem:[#allocation2] sm:$0xff] }
 0x135   : > { %v354_v26 = vsub.f32 0.0, %v352_v25 }
 0x137   : > { %v356_v28 = vmul.f32 %v354_v26, %v341_v24 }
 0x138   : > { %v353_v30 = vld [vmem:[#allocation2 + $0x8] sm:$0xff] }
 0x139   : > { %v355_v31 = vsub.f32 0.0, %v353_v30  ;;  %v358_v32 = vsel %vm350_vm4, %v356_v28, 0.0 }
 0x13a   : > { %v360_v35 = vsel %vm302_vm0, %v358_v32, 0.0 }
 0x13b   : > { %v357_v33 = vmul.f32 %v355_v31, %v342_v29 }
 0x13d   : > { %v359_v34 = vsel %vm351_vm5, %v357_v33, 0.0 }
 0x13e   : > { %v361_v36 = vsel %vm302_vm0, %v359_v34, 0.0 }
 0x13f   : > { %v362_v37 = vadd.f32 %v361_v36, %v360_v35 }
 0x141   : > { %363 = vadd.xlane.f32.xlu0 %v362_v37 }
 0x1ce   : > { %v364_v38 = vpop.xlane.xlu0 %363 }
 0x1cf   : > { %v365_v39 = vrot.slane %v364_v38, 4 }
 0x1d1   : > { %v366_v40 = vadd.f32 %v365_v39, %v364_v38 }
 0x1d3   : > { %v367_v41 = vrot.slane %v366_v40, 2 }
 0x1d5   : > { %v368_v42 = vadd.f32 %v367_v41, %v366_v40 }
 0x1d7   : > { %v369_v43 = vrot.slane %v368_v42, 1 }
 0x1d9   : > { %v370_v44 = vadd.f32 %v369_v43, %v368_v42 }
 0x1db   : > { %499 = vpush %v370_v44 }
 0x20c   : > { %s500_s26 = spop %499 }
 0x20d   : > { %v372_v45 = vstv %s500_s26 }
 0x20e   : > { %373 = vst [vmem:[%s252_s19] sm:$0xff] %v372_v45 }
 0x20f   : > { %572 = shalt.err (!%p569_p5)
}
 0x210   : > { %s573_s7 = scalar_lea.hbm %s746_s29, 128  ;;  %s577_s10 = scalar_lea.hbm %s794_s3, 256 }
 0x211   : > { %p574_p6 = scmp.ne.s32.totalorder %s746_s29, %s573_s7  ;;  %p578_p10 = scmp.lt.u32.totalorder %s746_s29, %s794_s3 }
 0x212   : > { %p579_p11 = scmp.lt.u32.totalorder %s577_s10, %s573_s7  ;;  %p581_p13 = scmp.lt.u32.totalorder %s573_s7, %s746_s29 }
 0x213   : > { %p575_p7 = pnand %p574_p6, %p702_p4 }
 0x214   : > { %p580_p12 = por %p579_p11, %p578_p10 }
 0x215   : > { %p576_p9 = pneg %p575_p7 }
 0x216   : > { %p582_p0 = por %p581_p13, %p580_p12 }
 0x218   : > { %p583_p1 = pnand %p582_p0, %p576_p9 }
 0x21a   : > { %586 = shalt.err (!%p583_p1)
}
 0x21b   : > { %501 = dma.vmem_to_hbm [thread:$0]  (%p702_p4), %s741_s21, 128, %s746_s29, %s375_s30  }
 0x21c PF: > { %p507_p2 = scmp.ge.s32.totalorder %s637_s17, 2  ;;  %s400_s19 = sand.u32 1, %s617_s12  }
 0x21d   : > { %s401_s23 = scalar_lea.sflag [#allocation4], %s400_s19 }
 0x21e   : > { %p504_p3 = pnand %p507_p2, %p709_p8 }
 0x220   : > { %612 = dma.done.wait (!%p504_p3), %s401_s23, 128  }
 0x221   : > { %614 = vsyncadd (!%p504_p3), %s401_s23, 4294967168  ;;  %s16_s17 = sadd.s32 1, %s637_s17   ;;  %s797_s12 = smov %s621_s13 }
 0x222   : > { %p13_p5 = scmp.ge.s32.totalorder %s16_s17, 4   ;;  %s798_s13 = smov %s625_s14 }
 0x223   : > { %s799_s14 = smov %s715_s25  ;;  %s800_s15 = smov %s633_s16 }
 0x224   : > { %s801_s16 = smov %s803_s20  ;;  %15 = sbr.rel (!%p13_p5) target bundleno = 4 (0x4), region = 81 }
 0x22b   :  { %406 = vsyncpa [#allocation4], 1 }
 0x22c   :  { %408 = vsyncpa [#allocation4 + $0x1], 1 }

</bundles_post_ra>
